<compile_context>
chip_gen: v7x
topology: tpu7x:2x2x1
jax: 0.10.0
libtpu: 0.0.40
codegen_flags: <defaults>
</compile_context>

<pallas_src>
from time import time

import jax
import jax.numpy as jnp
from jax.experimental import pallas as pl
from jax.experimental.pallas import tpu as pltpu


# ----------------------------------------------------------------------------
# Model dimensions (small, consistent with the module's forward)
# ----------------------------------------------------------------------------
B = 8            # number of segments (parallel IVPs)
D_IVP = 4        # state dimension of each IVP
N_PTS_ENC = 4    # n_pts_enc: observation points fed to the encoder
D_OBS = 2        # per-point observation dim
D_FEAT = N_PTS_ENC * D_OBS
D_IN = D_IVP + D_FEAT            # 12
HIDDEN = 32
N_MODES = 4      # latent modes produced by the encoder
D_Z = D_IVP + N_MODES            # 8
T = 8            # time points per segment
N_STEPS = T - 1

# packed-weight layout (rows x cols) = (HIDDEN+1, 2*HIDDEN + N_MODES + D_Z)
W_ROWS = HIDDEN + 1              # 33
C1 = HIDDEN                      # 32  : end of We1 block (cols 0:32)
C2 = C1 + N_MODES                # 36  : end of We2 block (cols 32:36)
C3 = C2 + HIDDEN                 # 68  : end of Wf1 block (cols 36:68)
C4 = C3 + D_Z                    # 76  : end of Wf2 block (cols 68:76)
W_COLS = C4

# packed xd layout: [x_ivps | x_feats_flat | ones | dt_0 .. dt_{T-2}]
DT_OFF = D_IN + 1                # 13
XD_COLS = DT_OFF + N_STEPS * D_Z  # 69


# ----------------------------------------------------------------------------
# Fused NHA kernel: encoder -> z0 -> unrolled Euler -> one lane-dense store
# ----------------------------------------------------------------------------
def nha_fused_kernel(xd_ref, w_ref, sol_ref):
    xd = xd_ref[...]                                        # (B, 69) f32
    w = w_ref[...]                                          # (33, 76) f32

    # ---- hoisted, loop-invariant weight slices (bf16 MXU operands) ----------
    we1 = w[:D_IN + 1, 0:C1].astype(jnp.bfloat16)           # (13, 32), be1 folded
    we2 = w[:HIDDEN, C1:C2].astype(jnp.bfloat16)            # (32, 4)
    be2 = jnp.broadcast_to(w[HIDDEN:HIDDEN + 1, C1:C2], (B, N_MODES))
    wf1 = w[:D_Z, C2:C3].astype(jnp.bfloat16)               # (8, 32)
    bf1 = jnp.broadcast_to(w[D_Z:D_Z + 1, C2:C3], (B, HIDDEN))
    wf2 = w[:HIDDEN, C3:C4].astype(jnp.bfloat16)            # (32, 8)
    bf2 = jnp.broadcast_to(w[HIDDEN:HIDDEN + 1, C3:C4], (B, D_Z))

    # ---- encoder: q = softmax( tanh([x,1] @ [We1;be1]) @ We2 + be2 ) --------
    x_aug = xd[:, :D_IN + 1]                                # (B, 13), ones lane
    h = jnp.tanh(jnp.dot(x_aug.astype(jnp.bfloat16), we1,
                         preferred_element_type=jnp.float32))
    logits = jnp.dot(h.astype(jnp.bfloat16), we2,
                     preferred_element_type=jnp.float32) + be2
    m = jnp.max(logits, axis=-1, keepdims=True)
    e = jnp.exp(logits - m)
    q = e / jnp.sum(e, axis=-1, keepdims=True)              # exact softmax (soft modes)

    # ---- z0 = concat([x_ivps, q], -1) ---------------------------------------
    z0 = jnp.concatenate([xd[:, :D_IVP], q], axis=-1)       # (B, 8)

    # ---- fully-unrolled Euler: z_{i+1} = z_i + dt_i * f(z_i) ----------------
    #      f(z) = tanh(z @ Wf1 + bf1) @ Wf2 + bf2
    z = z0
    outs = [z0]
    for i in range(N_STEPS):                                # static unroll
        dt = xd[:, DT_OFF + i * D_Z: DT_OFF + (i + 1) * D_Z]  # in-register slice
        hh = jnp.tanh(jnp.dot(z.astype(jnp.bfloat16), wf1,
                              preferred_element_type=jnp.float32) + bf1)
        f = jnp.dot(hh.astype(jnp.bfloat16), wf2,
                    preferred_element_type=jnp.float32) + bf2
        z = z + dt * f
        outs.append(z)

    # single lane-dense full-block store: lanes [t*D_Z:(t+1)*D_Z] = z_t
    sol_ref[...] = jnp.concatenate(outs, axis=-1)           # (B, T*D_Z)


def _vmem_spec():
    return pl.BlockSpec(memory_space=pltpu.MemorySpace.VMEM)


# ----------------------------------------------------------------------------
# Weight packing: one array -> one HBM->VMEM DMA
# ----------------------------------------------------------------------------
def _pack_weights(params):
    w = jnp.zeros((W_ROWS, W_COLS), jnp.float32)
    w = w.at[:D_IN, 0:C1].set(params["We1"])
    w = w.at[D_IN, 0:C1].set(params["be1"][0])
    w = w.at[:HIDDEN, C1:C2].set(params["We2"])
    w = w.at[HIDDEN, C1:C2].set(params["be2"][0])
    w = w.at[:D_Z, C2:C3].set(params["Wf1"])
    w = w.at[D_Z, C2:C3].set(params["bf1"][0])
    w = w.at[:HIDDEN, C3:C4].set(params["Wf2"])
    w = w.at[HIDDEN, C3:C4].set(params["bf2"][0])
    return w


# ----------------------------------------------------------------------------
# NHA forward (jitted wrapper: glue ops fuse, single gridless pallas_call)
# ----------------------------------------------------------------------------
@jax.jit
def _nha_forward_jit(x_ivps, x_feats, t_segments, params):
    x_feats_flat = x_feats.reshape(x_feats.shape[0], -1)    # (B, D_FEAT)
    ones = jnp.ones((B, 1), jnp.float32)

    # per-segment, per-step dt, lane-packed time-major: lanes [i*D_Z:(i+1)*D_Z]
    dts = (t_segments[:, 1:] - t_segments[:, :-1]).astype(jnp.float32)  # (B, T-1)
    dts_pack = jnp.repeat(dts, D_Z, axis=1)                 # (B, (T-1)*D_Z)

    xd = jnp.concatenate(
        [x_ivps.astype(jnp.float32), x_feats_flat.astype(jnp.float32),
         ones, dts_pack], axis=-1)                          # (B, 69)
    w_pack = _pack_weights(params)                          # (33, 76)

    sol2d = pl.pallas_call(
        nha_fused_kernel,
        out_shape=jax.ShapeDtypeStruct((B, T * D_Z), jnp.float32),
        in_specs=[_vmem_spec(), _vmem_spec()],
        out_specs=_vmem_spec(),
    )(xd, w_pack)

    # lane-dense (B, T*D_Z) -> time-major (T, B, D_Z) like the reference odeint
    return sol2d.reshape(B, T, D_Z).transpose(1, 0, 2)


def nha_forward(x_ivps, x_feats, t_segments, params):
    t0 = time()
    sol = jax.block_until_ready(
        _nha_forward_jit(x_ivps, x_feats, t_segments, params)
    )
    forward_t = time() - t0
    return sol, forward_t


# ----------------------------------------------------------------------------
# Deterministic parameter init (synthetic, no checkpoint)
# ----------------------------------------------------------------------------
def init_params():
    keys = jax.random.split(jax.random.PRNGKey(42), 8)
    s = 0.2
    return {
        "We1": s * jax.random.normal(keys[0], (D_IN, HIDDEN), jnp.float32),
        "be1": s * jax.random.normal(keys[1], (1, HIDDEN), jnp.float32),
        "We2": s * jax.random.normal(keys[2], (HIDDEN, N_MODES), jnp.float32),
        "be2": s * jax.random.normal(keys[3], (1, N_MODES), jnp.float32),
        "Wf1": s * jax.random.normal(keys[4], (D_Z, HIDDEN), jnp.float32),
        "bf1": s * jax.random.normal(keys[5], (1, HIDDEN), jnp.float32),
        "Wf2": s * jax.random.normal(keys[6], (HIDDEN, D_Z), jnp.float32),
        "bf2": s * jax.random.normal(keys[7], (1, D_Z), jnp.float32),
    }


if __name__ == "__main__":
    key = jax.random.PRNGKey(0)
    k1, k2 = jax.random.split(key)
    x_ivps = jax.random.normal(k1, (B, D_IVP), jnp.float32)
    x_feats = jax.random.normal(k2, (B, N_PTS_ENC, D_OBS), jnp.float32)
    # per-segment time grids (monotone, slightly different spacing per segment)
    base = jnp.linspace(0.0, 1.0, T, dtype=jnp.float32)            # (T,)
    scale = 1.0 + 0.1 * jnp.arange(B, dtype=jnp.float32)[:, None]  # (B, 1)
    t_segments = base[None, :] * scale                             # (B, T)

    params = init_params()

    # warmup (trace + compile), then a timed call (forward_t excludes compile)
    _ = jax.block_until_ready(_nha_forward_jit(x_ivps, x_feats, t_segments, params))
    sol, forward_t = nha_forward(x_ivps, x_feats, t_segments, params)
    sol = jax.block_until_ready(sol)

    assert sol.shape == (T, B, D_Z)
    assert jnp.all(jnp.isfinite(sol))
    print("KERNEL_OK")
</pallas_src>

<mosaic_0001>
module attributes {stable_mosaic.version = 11 : i64} {
  func.func @nha_fused_kernel(%arg0: memref<8x69xf32, #tpu.memory_space<vmem>>, %arg1: memref<33x76xf32, #tpu.memory_space<vmem>>, %arg2: memref<8x64xf32, #tpu.memory_space<vmem>>) attributes {dimension_semantics = [], scalar_prefetch = 0 : i64, scratch_operands = 0 : i64, tpu.core_type = #tpu.core_type<tc>} {
    %c0 = arith.constant 0 : index
    %c0_0 = arith.constant 0 : index
    %0 = vector.load %arg0[%c0, %c0_0] : memref<8x69xf32, #tpu.memory_space<vmem>>, vector<8x69xf32>
    %c0_1 = arith.constant 0 : index
    %c0_2 = arith.constant 0 : index
    %1 = vector.load %arg1[%c0_1, %c0_2] : memref<33x76xf32, #tpu.memory_space<vmem>>, vector<33x76xf32>
    %2 = vector.extract_strided_slice %1 {offsets = [0, 0], sizes = [13, 32], strides = [1, 1]} : vector<33x76xf32> to vector<13x32xf32>
    %3 = arith.truncf %2 : vector<13x32xf32> to vector<13x32xbf16>
    %4 = vector.extract_strided_slice %1 {offsets = [0, 32], sizes = [32, 4], strides = [1, 1]} : vector<33x76xf32> to vector<32x4xf32>
    %5 = arith.truncf %4 : vector<32x4xf32> to vector<32x4xbf16>
    %6 = vector.extract_strided_slice %1 {offsets = [32, 32], sizes = [1, 4], strides = [1, 1]} : vector<33x76xf32> to vector<1x4xf32>
    %7 = vector.shape_cast %6 : vector<1x4xf32> to vector<1x4xf32>
    %8 = vector.broadcast %7 : vector<1x4xf32> to vector<8x4xf32>
    %9 = vector.extract_strided_slice %1 {offsets = [0, 36], sizes = [8, 32], strides = [1, 1]} : vector<33x76xf32> to vector<8x32xf32>
    %10 = arith.truncf %9 : vector<8x32xf32> to vector<8x32xbf16>
    %11 = vector.extract_strided_slice %1 {offsets = [8, 36], sizes = [1, 32], strides = [1, 1]} : vector<33x76xf32> to vector<1x32xf32>
    %12 = vector.shape_cast %11 : vector<1x32xf32> to vector<1x32xf32>
    %13 = vector.broadcast %12 : vector<1x32xf32> to vector<8x32xf32>
    %14 = vector.extract_strided_slice %1 {offsets = [0, 68], sizes = [32, 8], strides = [1, 1]} : vector<33x76xf32> to vector<32x8xf32>
    %15 = arith.truncf %14 : vector<32x8xf32> to vector<32x8xbf16>
    %16 = vector.extract_strided_slice %1 {offsets = [32, 68], sizes = [1, 8], strides = [1, 1]} : vector<33x76xf32> to vector<1x8xf32>
    %17 = vector.shape_cast %16 : vector<1x8xf32> to vector<1x8xf32>
    %18 = vector.broadcast %17 : vector<1x8xf32> to vector<8x8xf32>
    %19 = vector.extract_strided_slice %0 {offsets = [0, 0], sizes = [8, 13], strides = [1, 1]} : vector<8x69xf32> to vector<8x13xf32>
    %20 = arith.truncf %19 : vector<8x13xf32> to vector<8x13xbf16>
    %cst = arith.constant dense<0.000000e+00> : vector<8x32xf32>
    %21 = tpu.matmul %20, %3, %cst {dimension_numbers = #tpu.dot_dimension_numbers<[1], [0], [0], [1], [0, 0, 1, 1], [], []>} : vector<8x13xbf16>, vector<13x32xbf16>, vector<8x32xf32> -> vector<8x32xf32>
    %22 = math.tanh %21 : vector<8x32xf32>
    %23 = arith.truncf %22 : vector<8x32xf32> to vector<8x32xbf16>
    %cst_3 = arith.constant dense<0.000000e+00> : vector<8x4xf32>
    %24 = tpu.matmul %23, %5, %cst_3 {dimension_numbers = #tpu.dot_dimension_numbers<[1], [0], [0], [1], [0, 0, 1, 1], [], []>} : vector<8x32xbf16>, vector<32x4xbf16>, vector<8x4xf32> -> vector<8x4xf32>
    %25 = arith.addf %24, %8 : vector<8x4xf32>
    %cst_4 = arith.constant dense<0xFF800000> : vector<8xf32>
    %26 = vector.multi_reduction <maximumf>, %25, %cst_4 [1] : vector<8x4xf32> to vector<8xf32>
    %27 = vector.shape_cast %26 : vector<8xf32> to vector<8x1xf32>
    %28 = vector.broadcast %27 : vector<8x1xf32> to vector<8x4xf32>
    %29 = arith.subf %25, %28 : vector<8x4xf32>
    %30 = math.exp %29 : vector<8x4xf32>
    %cst_5 = arith.constant dense<0.000000e+00> : vector<8xf32>
    %31 = vector.multi_reduction <add>, %30, %cst_5 [1] : vector<8x4xf32> to vector<8xf32>
    %32 = vector.shape_cast %31 : vector<8xf32> to vector<8x1xf32>
    %33 = vector.broadcast %32 : vector<8x1xf32> to vector<8x4xf32>
    %34 = arith.divf %30, %33 : vector<8x4xf32>
    %35 = vector.extract_strided_slice %0 {offsets = [0, 0], sizes = [8, 4], strides = [1, 1]} : vector<8x69xf32> to vector<8x4xf32>
    %36 = tpu.concatenate %35, %34 in 1 : vector<8x4xf32>, vector<8x4xf32> -> vector<8x8xf32>
    %37 = vector.extract_strided_slice %0 {offsets = [0, 13], sizes = [8, 8], strides = [1, 1]} : vector<8x69xf32> to vector<8x8xf32>
    %38 = arith.truncf %36 : vector<8x8xf32> to vector<8x8xbf16>
    %cst_6 = arith.constant dense<0.000000e+00> : vector<8x32xf32>
    %39 = tpu.matmul %38, %10, %cst_6 {dimension_numbers = #tpu.dot_dimension_numbers<[1], [0], [0], [1], [0, 0, 1, 1], [], []>} : vector<8x8xbf16>, vector<8x32xbf16>, vector<8x32xf32> -> vector<8x32xf32>
    %40 = arith.addf %39, %13 : vector<8x32xf32>
    %41 = math.tanh %40 : vector<8x32xf32>
    %42 = arith.truncf %41 : vector<8x32xf32> to vector<8x32xbf16>
    %cst_7 = arith.constant dense<0.000000e+00> : vector<8x8xf32>
    %43 = tpu.matmul %42, %15, %cst_7 {dimension_numbers = #tpu.dot_dimension_numbers<[1], [0], [0], [1], [0, 0, 1, 1], [], []>} : vector<8x32xbf16>, vector<32x8xbf16>, vector<8x8xf32> -> vector<8x8xf32>
    %44 = arith.addf %43, %18 : vector<8x8xf32>
    %45 = arith.mulf %37, %44 : vector<8x8xf32>
    %46 = arith.addf %36, %45 : vector<8x8xf32>
    %47 = vector.extract_strided_slice %0 {offsets = [0, 21], sizes = [8, 8], strides = [1, 1]} : vector<8x69xf32> to vector<8x8xf32>
    %48 = arith.truncf %46 : vector<8x8xf32> to vector<8x8xbf16>
    %cst_8 = arith.constant dense<0.000000e+00> : vector<8x32xf32>
    %49 = tpu.matmul %48, %10, %cst_8 {dimension_numbers = #tpu.dot_dimension_numbers<[1], [0], [0], [1], [0, 0, 1, 1], [], []>} : vector<8x8xbf16>, vector<8x32xbf16>, vector<8x32xf32> -> vector<8x32xf32>
    %50 = arith.addf %49, %13 : vector<8x32xf32>
    %51 = math.tanh %50 : vector<8x32xf32>
    %52 = arith.truncf %51 : vector<8x32xf32> to vector<8x32xbf16>
    %cst_9 = arith.constant dense<0.000000e+00> : vector<8x8xf32>
    %53 = tpu.matmul %52, %15, %cst_9 {dimension_numbers = #tpu.dot_dimension_numbers<[1], [0], [0], [1], [0, 0, 1, 1], [], []>} : vector<8x32xbf16>, vector<32x8xbf16>, vector<8x8xf32> -> vector<8x8xf32>
    %54 = arith.addf %53, %18 : vector<8x8xf32>
    %55 = arith.mulf %47, %54 : vector<8x8xf32>
    %56 = arith.addf %46, %55 : vector<8x8xf32>
    %57 = vector.extract_strided_slice %0 {offsets = [0, 29], sizes = [8, 8], strides = [1, 1]} : vector<8x69xf32> to vector<8x8xf32>
    %58 = arith.truncf %56 : vector<8x8xf32> to vector<8x8xbf16>
    %cst_10 = arith.constant dense<0.000000e+00> : vector<8x32xf32>
    %59 = tpu.matmul %58, %10, %cst_10 {dimension_numbers = #tpu.dot_dimension_numbers<[1], [0], [0], [1], [0, 0, 1, 1], [], []>} : vector<8x8xbf16>, vector<8x32xbf16>, vector<8x32xf32> -> vector<8x32xf32>
    %60 = arith.addf %59, %13 : vector<8x32xf32>
    %61 = math.tanh %60 : vector<8x32xf32>
    %62 = arith.truncf %61 : vector<8x32xf32> to vector<8x32xbf16>
    %cst_11 = arith.constant dense<0.000000e+00> : vector<8x8xf32>
    %63 = tpu.matmul %62, %15, %cst_11 {dimension_numbers = #tpu.dot_dimension_numbers<[1], [0], [0], [1], [0, 0, 1, 1], [], []>} : vector<8x32xbf16>, vector<32x8xbf16>, vector<8x8xf32> -> vector<8x8xf32>
    %64 = arith.addf %63, %18 : vector<8x8xf32>
    %65 = arith.mulf %57, %64 : vector<8x8xf32>
    %66 = arith.addf %56, %65 : vector<8x8xf32>
    %67 = vector.extract_strided_slice %0 {offsets = [0, 37], sizes = [8, 8], strides = [1, 1]} : vector<8x69xf32> to vector<8x8xf32>
    %68 = arith.truncf %66 : vector<8x8xf32> to vector<8x8xbf16>
    %cst_12 = arith.constant dense<0.000000e+00> : vector<8x32xf32>
    %69 = tpu.matmul %68, %10, %cst_12 {dimension_numbers = #tpu.dot_dimension_numbers<[1], [0], [0], [1], [0, 0, 1, 1], [], []>} : vector<8x8xbf16>, vector<8x32xbf16>, vector<8x32xf32> -> vector<8x32xf32>
    %70 = arith.addf %69, %13 : vector<8x32xf32>
    %71 = math.tanh %70 : vector<8x32xf32>
    %72 = arith.truncf %71 : vector<8x32xf32> to vector<8x32xbf16>
    %cst_13 = arith.constant dense<0.000000e+00> : vector<8x8xf32>
    %73 = tpu.matmul %72, %15, %cst_13 {dimension_numbers = #tpu.dot_dimension_numbers<[1], [0], [0], [1], [0, 0, 1, 1], [], []>} : vector<8x32xbf16>, vector<32x8xbf16>, vector<8x8xf32> -> vector<8x8xf32>
    %74 = arith.addf %73, %18 : vector<8x8xf32>
    %75 = arith.mulf %67, %74 : vector<8x8xf32>
    %76 = arith.addf %66, %75 : vector<8x8xf32>
    %77 = vector.extract_strided_slice %0 {offsets = [0, 45], sizes = [8, 8], strides = [1, 1]} : vector<8x69xf32> to vector<8x8xf32>
    %78 = arith.truncf %76 : vector<8x8xf32> to vector<8x8xbf16>
    %cst_14 = arith.constant dense<0.000000e+00> : vector<8x32xf32>
    %79 = tpu.matmul %78, %10, %cst_14 {dimension_numbers = #tpu.dot_dimension_numbers<[1], [0], [0], [1], [0, 0, 1, 1], [], []>} : vector<8x8xbf16>, vector<8x32xbf16>, vector<8x32xf32> -> vector<8x32xf32>
    %80 = arith.addf %79, %13 : vector<8x32xf32>
    %81 = math.tanh %80 : vector<8x32xf32>
    %82 = arith.truncf %81 : vector<8x32xf32> to vector<8x32xbf16>
    %cst_15 = arith.constant dense<0.000000e+00> : vector<8x8xf32>
    %83 = tpu.matmul %82, %15, %cst_15 {dimension_numbers = #tpu.dot_dimension_numbers<[1], [0], [0], [1], [0, 0, 1, 1], [], []>} : vector<8x32xbf16>, vector<32x8xbf16>, vector<8x8xf32> -> vector<8x8xf32>
    %84 = arith.addf %83, %18 : vector<8x8xf32>
    %85 = arith.mulf %77, %84 : vector<8x8xf32>
    %86 = arith.addf %76, %85 : vector<8x8xf32>
    %87 = vector.extract_strided_slice %0 {offsets = [0, 53], sizes = [8, 8], strides = [1, 1]} : vector<8x69xf32> to vector<8x8xf32>
    %88 = arith.truncf %86 : vector<8x8xf32> to vector<8x8xbf16>
    %cst_16 = arith.constant dense<0.000000e+00> : vector<8x32xf32>
    %89 = tpu.matmul %88, %10, %cst_16 {dimension_numbers = #tpu.dot_dimension_numbers<[1], [0], [0], [1], [0, 0, 1, 1], [], []>} : vector<8x8xbf16>, vector<8x32xbf16>, vector<8x32xf32> -> vector<8x32xf32>
    %90 = arith.addf %89, %13 : vector<8x32xf32>
    %91 = math.tanh %90 : vector<8x32xf32>
    %92 = arith.truncf %91 : vector<8x32xf32> to vector<8x32xbf16>
    %cst_17 = arith.constant dense<0.000000e+00> : vector<8x8xf32>
    %93 = tpu.matmul %92, %15, %cst_17 {dimension_numbers = #tpu.dot_dimension_numbers<[1], [0], [0], [1], [0, 0, 1, 1], [], []>} : vector<8x32xbf16>, vector<32x8xbf16>, vector<8x8xf32> -> vector<8x8xf32>
    %94 = arith.addf %93, %18 : vector<8x8xf32>
    %95 = arith.mulf %87, %94 : vector<8x8xf32>
    %96 = arith.addf %86, %95 : vector<8x8xf32>
    %97 = vector.extract_strided_slice %0 {offsets = [0, 61], sizes = [8, 8], strides = [1, 1]} : vector<8x69xf32> to vector<8x8xf32>
    %98 = arith.truncf %96 : vector<8x8xf32> to vector<8x8xbf16>
    %cst_18 = arith.constant dense<0.000000e+00> : vector<8x32xf32>
    %99 = tpu.matmul %98, %10, %cst_18 {dimension_numbers = #tpu.dot_dimension_numbers<[1], [0], [0], [1], [0, 0, 1, 1], [], []>} : vector<8x8xbf16>, vector<8x32xbf16>, vector<8x32xf32> -> vector<8x32xf32>
    %100 = arith.addf %99, %13 : vector<8x32xf32>
    %101 = math.tanh %100 : vector<8x32xf32>
    %102 = arith.truncf %101 : vector<8x32xf32> to vector<8x32xbf16>
    %cst_19 = arith.constant dense<0.000000e+00> : vector<8x8xf32>
    %103 = tpu.matmul %102, %15, %cst_19 {dimension_numbers = #tpu.dot_dimension_numbers<[1], [0], [0], [1], [0, 0, 1, 1], [], []>} : vector<8x32xbf16>, vector<32x8xbf16>, vector<8x8xf32> -> vector<8x8xf32>
    %104 = arith.addf %103, %18 : vector<8x8xf32>
    %105 = arith.mulf %97, %104 : vector<8x8xf32>
    %106 = arith.addf %96, %105 : vector<8x8xf32>
    %107 = tpu.concatenate %36, %46, %56, %66, %76, %86, %96, %106 in 1 : vector<8x8xf32>, vector<8x8xf32>, vector<8x8xf32>, vector<8x8xf32>, vector<8x8xf32>, vector<8x8xf32>, vector<8x8xf32>, vector<8x8xf32> -> vector<8x64xf32>
    %c0_20 = arith.constant 0 : index
    %c0_21 = arith.constant 0 : index
    %108 = vector.load %arg2[%c0_20, %c0_21] : memref<8x64xf32, #tpu.memory_space<vmem>>, vector<8x64xf32>
    tpu.vector_store %arg2[%c0_20, %c0_21], %107 {strides = array<i32>} : memref<8x64xf32, #tpu.memory_space<vmem>>, vector<8x64xf32>,
    return
  }
}

</mosaic_0001>

<bundles_post_ra>
// kernel: _nha_forward_jit.1
= control target key start
LH: loop header
LB: loop body
LE: loop exit
PB: predicated region body
PF: predicated region fallthrough
CT: control target
= control target key end

     0   :  { %vm34_vm0 = vcmask 1045504   ;;  %vm35_vm1 = vcmask 1046528   ;;  %v1133_v0 = vmov 0.0   ;;  %v1134_v3 = vmov 65535   ;;  %s1136_s19 = smov 96   ;;  %s1138_s21 = smov 60   ;;  %s1373_s1 = inlined_call_operand.vmem [shape: f32[33,76], index: 1, kind: input, shape index: {}]   ;;  %s1374_s0 = inlined_call_operand.vmem [shape: f32[8,69], index: 0, kind: input, shape index: {}]   ;;  %s1375_s2 = inlined_call_operand.vmem [shape: f32[8,64], index: 2, kind: output, shape index: {}]  }
   0x1   :  { %973 = vmatprep.subr.bf16.mxu0 %v1133_v0  ;;  %v13_v1 = vld [vmem:[%s1373_s1] sm:$0xff]  ;;  %v1183_v2 = vld [vmem:[%s1373_s1 + $0x8] sm:$0xff]  ;;  %v36_v4 = vsel %vm34_vm0, 4294967295, %v1134_v3  ;;  %979 = vmatprep.subr.bf16.mxu1 %v1133_v0  ;;  %vm1135_vm2 = vmmov 0   ;;  %v15_v8 = vld [vmem:[%s1373_s1 + $0x10] sm:$0xff]  ;;  %vm30_vm3 = vcmask 105472   ;;  %v25_v38 = vlaneseq }
   0x2   :  { %v1187_v5 = vpack.c.bf16 %v1183_v2, %v13_v1  ;;  %v37_v6 = vsel %vm35_vm1, %v36_v4, 0  ;;  %975 = vmatprep.mubr.msk.bf16.mxu0 %vm1135_vm2, %v1133_v0  ;;  %v1194_v7 = vld [vmem:[%s1374_s0] sm:$0xff]  ;;  %v16_v9 = vld [vmem:[%s1373_s1 + $0x18] sm:$0xff]  ;;  %983 = vmatprep.mubr.msk.bf16.mxu1 %vm1135_vm2, %v1133_v0  ;;  %vm95_vm4 = vcmask 261120   ;;  %vm139_vm5 = vcmask 31744   ;;  %s1139_s22 = smov 4  }
   0x3   :  { %v1206_v11 = vpack.c.bf16 %v16_v9, %v15_v8  ;;  %v29_v12 = vpack.c.bf16 %v1194_v7, %v1194_v7  ;;  %v916_v13 = vld [vmem:[%s1373_s1 + $0x20] ss:$0 sm:$0xff]  ;;  %v24_v34 = vpack.c.bf16 %v13_v1, %v13_v1  ;;  %s1137_s1 = smov 92   ;;  %vm168_vm6 = vcmask 1043456   ;;  %s1140_s23 = smov 13  }
   0x4   :  { %v39_v10 = vand.u32 %v37_v6, %v1187_v5  ;;  %85 = vrot.lane.b32.xlu0 %v1187_v5, %s1136_s19  ;;  %92 = vrot.lane.b32.xlu1 %v916_v13, %s1136_s19  ;;  %v26_v39 = vshrl.u32 %v25_v38, 7  ;;  %vm164_vm7 = vcmask 64512   ;;  %s1141_s24 = smov 115   ;;  %s1142_s25 = smov 21   ;;  %vm899_vm8 = vcmask 130048  }
   0x5   :  { %s1143_s26 = smov 107   ;;  %s1144_s27 = smov 29   ;;  %vm901_vm9 = vcmask 195584   ;;  %vm904_vm10 = vcmask 326656   ;;  %vm906_vm11 = vcmask 392192   ;;  %vm908_vm12 = vcmask 457728  }
   0x6   :  { %974 = vmatpush3.bf16.msra.mxu0 %v39_v10  ;;  %v27_v40 = vsub.s32 0, %v26_v39  ;;  %s1145_s28 = smov 99   ;;  %s1146_s29 = smov 37   ;;  %vm910_vm13 = vcmask 523264  }
   0x7   :  { %987 = vmatprep.subr.bf16.mxu0 %v1133_v0  ;;  %s1147_s30 = smov 91   ;;  %s1148_s3 = smov 45  }
   0x8   :  { %87 = vrot.lane.b32.xlu0 %v1206_v11, %s1136_s19  ;;  %v28_v43 = vrot.slane %v1183_v2, %v27_v40  ;;  %s1149_s4 = smov 83   ;;  %s1150_s5 = smov 53  }
   0x9   :  { %976 = vmatmul.mubr.msk.bf16.vlgmr.msra.gmra.mrb[0].mxu0 %vm30_vm3, %v29_v12  ;;  %s1151_s6 = smov 75   ;;  %s1152_s7 = smov 61  }
   0xa   :  { %989 = vmatprep.mubr.msk.bf16.mxu0 %vm1135_vm2, %v1133_v0  ;;  %s1153_s8 = smov 8   ;;  %s1154_s9 = smov 24  }
   0xb   :  { %s1155_s10 = smov 40   ;;  %s1156_s11 = smov 67  }
   0xc   :  { %s1157_s12 = smov 16   ;;  %s1158_s13 = smov 32  }
   0xd   :  { %s1159_s14 = smov 48   ;;  %s1160_s15 = smov 56  }
  0x76   :  { %v86_v14 = vpop.permute.xlu0 %85  ;;  %v93_v22 = vpop.permute.xlu1 %92 }
  0x77   :  { %980 = vmatpush3.bf16.msra.mxu1 %v86_v14 }
  0x78   :  { %981 = vmatprep.subr.bf16.mxu1 %v1133_v0 }
  0x7a   :  { %v88_v15 = vpop.permute.xlu0 %87 }
  0x7b   :  { %982 = vmatpush3.bf16.msra.mxu1 %v88_v15 }
  0x7c   :  { %993 = vmatprep.subr.bf16.mxu1 %v1133_v0 }
  0xdc   :  { %v75_v16 = vpop.f32.mrb[0].mxu0 }
  0xdd   :  { %1113 = vtanh.f32 %v75_v16  ;;  %v977_v17 = vpop.f32.mrb[1].mxu0 }
  0xde   :  { %v78_v18 = vpop.f32.mrb[2].mxu0 }
  0xdf   :  { %v978_v19 = vpop.f32.mrb[3].mxu0 }
  0xe7   :  { %v1114_v20 = vpop.eup %1113 }
  0xe8   :  { %v82_v21 = vpack.c.bf16 %v1114_v20, %v1114_v20 }
  0xea   :  { %984 = vmatmul.mubr.msk.bf16.vlgmr.msra.gmra.mrb[0].mxu1 %vm95_vm4, %v82_v21 }
  0xeb   :  { %997 = vmatprep.mubr.msk.bf16.mxu1 %vm1135_vm2, %v1133_v0 }
 0x1bd   :  { %v133_v23 = vpop.f32.mrb[0].mxu1 }
 0x1be   :  { %v134_v24 = vadd.f32 %v133_v23, %v93_v22  ;;  %v985_v25 = vpop.f32.mrb[1].mxu1 }
 0x1bf   :  { %v136_v26 = vpop.f32.mrb[2].mxu1 }
 0x1c0   :  { %v986_v27 = vpop.f32.mrb[3].mxu1  ;;  %v140_v28 = vsel %vm139_vm5, %v134_v24, -inf }
 0x1c1   :  { %141 = vmax.xlane.f32.xlu1 %v140_v28 }
 0x24e   :  { %v142_v29 = vpop.xlane.xlu1 %141 }
 0x24f   :  { %v143_v30 = vsub.f32 %v134_v24, %v142_v29 }
 0x251   :  { %v144_v31 = vmul.f32 1.442695, %v143_v30 }
 0x253   :  { %1115 = vpow2.f32 %v144_v31 }
 0x25d   :  { %v1116_v32 = vpop.eup %1115 }
 0x25e   :  { %v146_v33 = vsel %vm139_vm5, %v1116_v32, 0.0 }
 0x25f   :  { %147 = vadd.xlane.f32.xlu0 %v146_v33 }
 0x275   :  { %158 = vrot.lane.b32.xlu0 %v24_v34, %s1137_s1 }
 0x279   :  { %214 = vrot.lane.b32.xlu0 %v1187_v5, %s1138_s21 }
 0x27d   :  { %220 = vrot.lane.b32.xlu0 %v916_v13, %s1138_s21 }
 0x2ec   :  { %v148_v35 = vpop.xlane.xlu0 %147 }
 0x2ed   :  { %1117 = vrcp.f32 %v148_v35 }
 0x2f0   :  { %v159_v36 = vpop.permute.xlu0 %158 }
 0x2f1   :  { %v1224_v37 = vsel %vm168_vm6, %v159_v36, 0 }
 0x2f2   :  { %988 = vmatpush3.bf16.msra.mxu0 %v1224_v37 }
 0x2f3   :  { %1001 = vmatprep.subr.bf16.mxu0 %v1133_v0 }
 0x2f4   :  { %v1244_v48 = vpop.permute.xlu0 %214 }
 0x2f5   :  { %994 = vmatpush3.bf16.msra.mxu1 %v1244_v48 }
 0x2f6   :  { %995 = vmatprep.subr.bf16.mxu1 %v1133_v0 }
 0x2f7   :  { %v1118_v41 = vpop.eup %1117 }
 0x2f8   :  { %v150_v42 = vmul.f32 %v1118_v41, %v1116_v32  ;;  %v1260_v57 = vpop.permute.xlu0 %220 }
 0x2fa   :  { %152 = vrot.lane.b32.xlu1 %v150_v42, %s1139_s22 }
 0x2fe   :  { %161 = vrot.lane.b32.xlu1 %v28_v43, %s1137_s1 }
 0x302   :  { %216 = vrot.lane.b32.xlu1 %v1206_v11, %s1138_s21 }
 0x36c   :  { %v153_v44 = vpop.permute.xlu1 %152 }
 0x36d   :  { %v1233_v45 = vsel %vm139_vm5, %v1194_v7, %v153_v44 }
 0x36e   :  { %v156_v46 = vpack.c.bf16 %v1233_v45, %v1233_v45 }
 0x370   :  { %990 = vmatmul.mubr.msk.bf16.vlgmr.msra.gmra.mrb[4].mxu0 %vm164_vm7, %v156_v46  ;;  %v1242_v47 = vpop.permute.xlu1 %161 }
 0x371   :  { %1002 = vmatpush3.bf16.msra.mxu0 %v1224_v37  ;;  %1003 = vmatprep.mubr.msk.bf16.mxu0 %vm1135_vm2, %v1133_v0 }
 0x372   :  { %1015 = vmatprep.subr.bf16.mxu0 %v1133_v0 }
 0x374   :  { %v1248_v49 = vpop.permute.xlu1 %216 }
 0x375   :  { %996 = vmatpush3.bf16.msra.mxu1 %v1248_v49 }
 0x376   :  { %1007 = vmatprep.subr.bf16.mxu1 %v1133_v0 }
 0x443   :  { %v206_v50 = vpop.f32.mrb[4].mxu0 }
 0x444   :  { %v207_v51 = vadd.f32 %v206_v50, %v1242_v47  ;;  %v991_v52 = vpop.f32.mrb[5].mxu0 }
 0x445   :  { %v209_v53 = vpop.f32.mrb[6].mxu0 }
 0x446   :  { %1119 = vtanh.f32 %v207_v51  ;;  %v992_v54 = vpop.f32.mrb[7].mxu0 }
 0x450   :  { %v1120_v55 = vpop.eup %1119 }
 0x451   :  { %v213_v56 = vpack.c.bf16 %v1120_v55, %v1120_v55 }
 0x453   :  { %998 = vmatmul.mubr.msk.bf16.vlgmr.msra.gmra.mrb[4].mxu1 %vm95_vm4, %v213_v56 }
 0x454   :  { %1008 = vmatpush3.bf16.msra.mxu1 %v1244_v48  ;;  %1011 = vmatprep.mubr.msk.bf16.mxu1 %vm1135_vm2, %v1133_v0 }
 0x455   :  { %1009 = vmatprep.subr.bf16.mxu1 %v1133_v0 }
 0x458   :  { %1010 = vmatpush3.bf16.msra.mxu1 %v1248_v49 }
 0x459   :  { %1021 = vmatprep.subr.bf16.mxu1 %v1133_v0 }
 0x526   :  { %v260_v58 = vpop.f32.mrb[4].mxu1 }
 0x527   :  { %v261_v59 = vadd.f32 %v260_v58, %v1260_v57  ;;  %v999_v60 = vpop.f32.mrb[5].mxu1 }
 0x528   :  { %v263_v61 = vpop.f32.mrb[6].mxu1 }
 0x529   :  { %267 = vrot.lane.b32.xlu1 %v261_v59, %s1140_s23  ;;  %v1000_v62 = vpop.f32.mrb[7].mxu1 }
 0x59b   :  { %v268_v63 = vpop.permute.xlu1 %267 }
 0x59c   :  { %v270_v1 = vmul.f32 %v268_v63, %v1194_v7 }
 0x59e   :  { %272 = vrot.lane.b32.xlu0 %v270_v1, %s1141_s24 }
 0x610   :  { %v273_v2 = vpop.permute.xlu0 %272 }
 0x611   :  { %v1265_v3 = vadd.f32 %v273_v2, %v1233_v45 }
 0x613   :  { %v276_v4 = vpack.c.bf16 %v1265_v3, %v1265_v3 }
 0x615   :  { %1004 = vmatmul.mubr.msk.bf16.vlgmr.msra.gmra.mrb[8].mxu0 %vm164_vm7, %v276_v4 }
 0x616   :  { %1016 = vmatpush3.bf16.msra.mxu0 %v1224_v37  ;;  %1017 = vmatprep.mubr.msk.bf16.mxu0 %vm1135_vm2, %v1133_v0 }
 0x617   :  { %1029 = vmatprep.subr.bf16.mxu0 %v1133_v0 }
 0x6e8   :  { %v314_v5 = vpop.f32.mrb[8].mxu0 }
 0x6e9   :  { %v315_v6 = vadd.f32 %v314_v5, %v1242_v47  ;;  %v1005_v8 = vpop.f32.mrb[9].mxu0 }
 0x6ea   :  { %v317_v9 = vpop.f32.mrb[10].mxu0 }
 0x6eb   :  { %1121 = vtanh.f32 %v315_v6  ;;  %v1006_v10 = vpop.f32.mrb[11].mxu0 }
 0x6f5   :  { %v1122_v11 = vpop.eup %1121 }
 0x6f6   :  { %v321_v12 = vpack.c.bf16 %v1122_v11, %v1122_v11 }
 0x6f8   :  { %1012 = vmatmul.mubr.msk.bf16.vlgmr.msra.gmra.mrb[8].mxu1 %vm95_vm4, %v321_v12 }
 0x6f9   :  { %1022 = vmatpush3.bf16.msra.mxu1 %v1244_v48  ;;  %1025 = vmatprep.mubr.msk.bf16.mxu1 %vm1135_vm2, %v1133_v0 }
 0x6fa   :  { %1023 = vmatprep.subr.bf16.mxu1 %v1133_v0 }
 0x6fd   :  { %1024 = vmatpush3.bf16.msra.mxu1 %v1248_v49 }
 0x6fe   :  { %1035 = vmatprep.subr.bf16.mxu1 %v1133_v0 }
 0x7cb   :  { %v359_v13 = vpop.f32.mrb[8].mxu1 }
 0x7cc   :  { %v360_v14 = vadd.f32 %v359_v13, %v1260_v57  ;;  %v1013_v15 = vpop.f32.mrb[9].mxu1 }
 0x7cd   :  { %v362_v16 = vpop.f32.mrb[10].mxu1 }
 0x7ce   :  { %366 = vrot.lane.b32.xlu1 %v360_v14, %s1142_s25  ;;  %v1014_v17 = vpop.f32.mrb[11].mxu1 }
 0x840   :  { %v367_v18 = vpop.permute.xlu1 %366 }
 0x841   :  { %v369_v19 = vmul.f32 %v367_v18, %v1194_v7 }
 0x843   :  { %371 = vrot.lane.b32.xlu0 %v369_v19, %s1143_s26 }
 0x8b5   :  { %v372_v20 = vpop.permute.xlu0 %371 }
 0x8b6   :  { %v1285_v21 = vadd.f32 %v372_v20, %v1265_v3 }
 0x8b8   :  { %v375_v22 = vpack.c.bf16 %v1285_v21, %v1285_v21 }
 0x8ba   :  { %1018 = vmatmul.mubr.msk.bf16.vlgmr.msra.gmra.mrb[12].mxu0 %vm164_vm7, %v375_v22 }
 0x8bb   :  { %1030 = vmatpush3.bf16.msra.mxu0 %v1224_v37  ;;  %1031 = vmatprep.mubr.msk.bf16.mxu0 %vm1135_vm2, %v1133_v0 }
 0x8bc   :  { %1043 = vmatprep.subr.bf16.mxu0 %v1133_v0 }
 0x98d   :  { %v413_v23 = vpop.f32.mrb[12].mxu0 }
 0x98e   :  { %v414_v24 = vadd.f32 %v413_v23, %v1242_v47  ;;  %v1019_v25 = vpop.f32.mrb[13].mxu0 }
 0x98f   :  { %v416_v26 = vpop.f32.mrb[14].mxu0 }
 0x990   :  { %1123 = vtanh.f32 %v414_v24  ;;  %v1020_v27 = vpop.f32.mrb[15].mxu0 }
 0x99a   :  { %v1124_v28 = vpop.eup %1123 }
 0x99b   :  { %v420_v29 = vpack.c.bf16 %v1124_v28, %v1124_v28 }
 0x99d   :  { %1026 = vmatmul.mubr.msk.bf16.vlgmr.msra.gmra.mrb[12].mxu1 %vm95_vm4, %v420_v29 }
 0x99e   :  { %1036 = vmatpush3.bf16.msra.mxu1 %v1244_v48  ;;  %1039 = vmatprep.mubr.msk.bf16.mxu1 %vm1135_vm2, %v1133_v0 }
 0x99f   :  { %1037 = vmatprep.subr.bf16.mxu1 %v1133_v0 }
 0x9a2   :  { %1038 = vmatpush3.bf16.msra.mxu1 %v1248_v49 }
 0x9a3   :  { %1049 = vmatprep.subr.bf16.mxu1 %v1133_v0 }
 0xa70   :  { %v458_v30 = vpop.f32.mrb[12].mxu1 }
 0xa71   :  { %v459_v31 = vadd.f32 %v458_v30, %v1260_v57  ;;  %v1027_v32 = vpop.f32.mrb[13].mxu1 }
 0xa72   :  { %v461_v33 = vpop.f32.mrb[14].mxu1 }
 0xa73   :  { %465 = vrot.lane.b32.xlu1 %v459_v31, %s1144_s27  ;;  %v1028_v34 = vpop.f32.mrb[15].mxu1 }
 0xae5   :  { %v466_v35 = vpop.permute.xlu1 %465 }
 0xae6   :  { %v468_v36 = vmul.f32 %v466_v35, %v1194_v7 }
 0xae8   :  { %470 = vrot.lane.b32.xlu0 %v468_v36, %s1145_s28 }
 0xb5a   :  { %v471_v38 = vpop.permute.xlu0 %470 }
 0xb5b   :  { %v1305_v39 = vadd.f32 %v471_v38, %v1285_v21 }
 0xb5d   :  { %v474_v40 = vpack.c.bf16 %v1305_v39, %v1305_v39 }
 0xb5f   :  { %1032 = vmatmul.mubr.msk.bf16.vlgmr.msra.gmra.mrb[16].mxu0 %vm164_vm7, %v474_v40 }
 0xb60   :  { %1044 = vmatpush3.bf16.msra.mxu0 %v1224_v37  ;;  %1045 = vmatprep.mubr.msk.bf16.mxu0 %vm1135_vm2, %v1133_v0 }
 0xb61   :  { %1057 = vmatprep.subr.bf16.mxu0 %v1133_v0 }
 0xc32   :  { %v512_v41 = vpop.f32.mrb[16].mxu0 }
 0xc33   :  { %v513_v42 = vadd.f32 %v512_v41, %v1242_v47  ;;  %v1033_v43 = vpop.f32.mrb[17].mxu0 }
 0xc34   :  { %v515_v44 = vpop.f32.mrb[18].mxu0 }
 0xc35   :  { %1125 = vtanh.f32 %v513_v42  ;;  %v1034_v46 = vpop.f32.mrb[19].mxu0 }
 0xc3f   :  { %v1126_v50 = vpop.eup %1125 }
 0xc40   :  { %v519_v51 = vpack.c.bf16 %v1126_v50, %v1126_v50 }
 0xc42   :  { %1040 = vmatmul.mubr.msk.bf16.vlgmr.msra.gmra.mrb[16].mxu1 %vm95_vm4, %v519_v51 }
 0xc43   :  { %1050 = vmatpush3.bf16.msra.mxu1 %v1244_v48  ;;  %1053 = vmatprep.mubr.msk.bf16.mxu1 %vm1135_vm2, %v1133_v0 }
 0xc44   :  { %1051 = vmatprep.subr.bf16.mxu1 %v1133_v0 }
 0xc47   :  { %1052 = vmatpush3.bf16.msra.mxu1 %v1248_v49 }
 0xc48   :  { %1063 = vmatprep.subr.bf16.mxu1 %v1133_v0 }
 0xd15   :  { %v557_v52 = vpop.f32.mrb[16].mxu1 }
 0xd16   :  { %v558_v53 = vadd.f32 %v557_v52, %v1260_v57  ;;  %v1041_v54 = vpop.f32.mrb[17].mxu1 }
 0xd17   :  { %v560_v55 = vpop.f32.mrb[18].mxu1 }
 0xd18   :  { %564 = vrot.lane.b32.xlu1 %v558_v53, %s1146_s29  ;;  %v1042_v56 = vpop.f32.mrb[19].mxu1 }
 0xd8a   :  { %v565_v58 = vpop.permute.xlu1 %564 }
 0xd8b   :  { %v567_v59 = vmul.f32 %v565_v58, %v1194_v7 }
 0xd8d   :  { %569 = vrot.lane.b32.xlu0 %v567_v59, %s1147_s30 }
 0xdff   :  { %v570_v60 = vpop.permute.xlu0 %569 }
 0xe00   :  { %v1325_v61 = vadd.f32 %v570_v60, %v1305_v39 }
 0xe02   :  { %v573_v62 = vpack.c.bf16 %v1325_v61, %v1325_v61 }
 0xe04   :  { %1046 = vmatmul.mubr.msk.bf16.vlgmr.msra.gmra.mrb[20].mxu0 %vm164_vm7, %v573_v62 }
 0xe05   :  { %1058 = vmatpush3.bf16.msra.mxu0 %v1224_v37  ;;  %1059 = vmatprep.mubr.msk.bf16.mxu0 %vm1135_vm2, %v1133_v0 }
 0xe06   :  { %1071 = vmatprep.subr.bf16.mxu0 %v1133_v0 }
 0xed7   :  { %v611_v63 = vpop.f32.mrb[20].mxu0 }
 0xed8   :  { %v612_v1 = vadd.f32 %v611_v63, %v1242_v47  ;;  %v1047_v2 = vpop.f32.mrb[21].mxu0 }
 0xed9   :  { %v614_v4 = vpop.f32.mrb[22].mxu0 }
 0xeda   :  { %1127 = vtanh.f32 %v612_v1  ;;  %v1048_v5 = vpop.f32.mrb[23].mxu0 }
 0xee4   :  { %v1128_v6 = vpop.eup %1127 }
 0xee5   :  { %v618_v8 = vpack.c.bf16 %v1128_v6, %v1128_v6 }
 0xee7   :  { %1054 = vmatmul.mubr.msk.bf16.vlgmr.msra.gmra.mrb[20].mxu1 %vm95_vm4, %v618_v8 }
 0xee8   :  { %1064 = vmatpush3.bf16.msra.mxu1 %v1244_v48  ;;  %1067 = vmatprep.mubr.msk.bf16.mxu1 %vm1135_vm2, %v1133_v0 }
 0xee9   :  { %1065 = vmatprep.subr.bf16.mxu1 %v1133_v0 }
 0xeec   :  { %1066 = vmatpush3.bf16.msra.mxu1 %v1248_v49 }
 0xeed   :  { %1077 = vmatprep.subr.bf16.mxu1 %v1133_v0 }
 0xfba   :  { %v656_v9 = vpop.f32.mrb[20].mxu1 }
 0xfbb   :  { %v657_v10 = vadd.f32 %v656_v9, %v1260_v57  ;;  %v1055_v11 = vpop.f32.mrb[21].mxu1 }
 0xfbc   :  { %v659_v12 = vpop.f32.mrb[22].mxu1 }
 0xfbd   :  { %663 = vrot.lane.b32.xlu1 %v657_v10, %s1148_s3  ;;  %v1056_v13 = vpop.f32.mrb[23].mxu1 }
0x102f   :  { %v664_v14 = vpop.permute.xlu1 %663 }
0x1030   :  { %v666_v15 = vmul.f32 %v664_v14, %v1194_v7 }
0x1032   :  { %668 = vrot.lane.b32.xlu0 %v666_v15, %s1149_s4 }
0x10a4   :  { %v669_v16 = vpop.permute.xlu0 %668 }
0x10a5   :  { %v671_v17 = vadd.f32 %v669_v16, %v1325_v61 }
0x10a7   :  { %v672_v18 = vpack.c.bf16 %v671_v17, %v671_v17 }
0x10a9   :  { %1060 = vmatmul.mubr.msk.bf16.vlgmr.msra.gmra.mrb[24].mxu0 %vm164_vm7, %v672_v18 }
0x10aa   :  { %1072 = vmatpush3.bf16.msra.mxu0 %v1224_v37  ;;  %1073 = vmatprep.mubr.msk.bf16.mxu0 %vm1135_vm2, %v1133_v0 }
0x117c   :  { %v710_v19 = vpop.f32.mrb[24].mxu0 }
0x117d   :  { %v711_v20 = vadd.f32 %v710_v19, %v1242_v47  ;;  %v1061_v22 = vpop.f32.mrb[25].mxu0 }
0x117e   :  { %v713_v23 = vpop.f32.mrb[26].mxu0 }
0x117f   :  { %1129 = vtanh.f32 %v711_v20  ;;  %v1062_v24 = vpop.f32.mrb[27].mxu0 }
0x1189   :  { %v1130_v25 = vpop.eup %1129 }
0x118a   :  { %v717_v26 = vpack.c.bf16 %v1130_v25, %v1130_v25 }
0x118c   :  { %1068 = vmatmul.mubr.msk.bf16.vlgmr.msra.gmra.mrb[24].mxu1 %vm95_vm4, %v717_v26 }
0x118d   :  { %1078 = vmatpush3.bf16.msra.mxu1 %v1244_v48  ;;  %1081 = vmatprep.mubr.msk.bf16.mxu1 %vm1135_vm2, %v1133_v0 }
0x118e   :  { %1079 = vmatprep.subr.bf16.mxu1 %v1133_v0 }
0x1191   :  { %1080 = vmatpush3.bf16.msra.mxu1 %v1248_v49 }
0x125f   :  { %v755_v37 = vpop.f32.mrb[24].mxu1 }
0x1260   :  { %v756_v27 = vadd.f32 %v755_v37, %v1260_v57  ;;  %v1069_v28 = vpop.f32.mrb[25].mxu1 }
0x1261   :  { %v758_v29 = vpop.f32.mrb[26].mxu1 }
0x1262   :  { %762 = vrot.lane.b32.xlu1 %v756_v27, %s1150_s5  ;;  %v1070_v30 = vpop.f32.mrb[27].mxu1 }
0x12d4   :  { %v763_v31 = vpop.permute.xlu1 %762 }
0x12d5   :  { %v765_v32 = vmul.f32 %v763_v31, %v1194_v7 }
0x12d7   :  { %767 = vrot.lane.b32.xlu0 %v765_v32, %s1151_s6 }
0x1349   :  { %v768_v48 = vpop.permute.xlu0 %767 }
0x134a   :  { %v770_v33 = vadd.f32 %v768_v48, %v671_v17 }
0x134c   :  { %v771_v34 = vpack.c.bf16 %v770_v33, %v770_v33 }
0x134e   :  { %1074 = vmatmul.mubr.msk.bf16.vlgmr.msra.gmra.mrb[28].mxu0 %vm164_vm7, %v771_v34 }
0x1421   :  { %v809_v0 = vpop.f32.mrb[28].mxu0 }
0x1422   :  { %v810_v49 = vadd.f32 %v809_v0, %v1242_v47  ;;  %v1075_v35 = vpop.f32.mrb[29].mxu0 }
0x1423   :  { %v812_v36 = vpop.f32.mrb[30].mxu0 }
0x1424   :  { %1131 = vtanh.f32 %v810_v49  ;;  %v1076_v38 = vpop.f32.mrb[31].mxu0 }
0x142e   :  { %v1132_v40 = vpop.eup %1131 }
0x142f   :  { %v816_v41 = vpack.c.bf16 %v1132_v40, %v1132_v40 }
0x1431   :  { %1082 = vmatmul.mubr.msk.bf16.vlgmr.msra.gmra.mrb[28].mxu1 %vm95_vm4, %v816_v41 }
0x1504   :  { %v854_v42 = vpop.f32.mrb[28].mxu1 }
0x1505   :  { %v855_v43 = vadd.f32 %v854_v42, %v1260_v57  ;;  %v1083_v44 = vpop.f32.mrb[29].mxu1 }
0x1506   :  { %v857_v46 = vpop.f32.mrb[30].mxu1 }
0x1507   :  { %861 = vrot.lane.b32.xlu1 %v855_v43, %s1152_s7  ;;  %v1084_v50 = vpop.f32.mrb[31].mxu1 }
0x150b   :  { %871 = vrot.lane.b32.xlu1 %v1265_v3, %s1153_s8 }
0x150f   :  { %879 = vrot.lane.b32.xlu1 %v1305_v39, %s1154_s9 }
0x1513   :  { %887 = vrot.lane.b32.xlu1 %v671_v17, %s1155_s10 }
0x1579   :  { %v862_v47 = vpop.permute.xlu1 %861 }
0x157a   :  { %v864_v51 = vmul.f32 %v862_v47, %v1194_v7 }
0x157c   :  { %866 = vrot.lane.b32.xlu0 %v864_v51, %s1156_s11 }
0x157d   :  { %v872_v39 = vpop.permute.xlu1 %871 }
0x157e   :  { %v898_v7 = vsel %vm164_vm7, %v1233_v45, %v872_v39 }
0x1580   :  { %875 = vrot.lane.b32.xlu0 %v1285_v21, %s1157_s12 }
0x1581   :  { %v880_v53 = vpop.permute.xlu1 %879 }
0x1584   :  { %883 = vrot.lane.b32.xlu0 %v1325_v61, %s1158_s13 }
0x1585   :  { %v888_v56 = vpop.permute.xlu1 %887 }
0x1588   :  { %891 = vrot.lane.b32.xlu0 %v770_v33, %s1159_s14 }
0x15ee   :  { %v867_v57 = vpop.permute.xlu0 %866 }
0x15ef   :  { %v869_v3 = vadd.f32 %v867_v57, %v770_v33 }
0x15f1   :  { %895 = vrot.lane.b32.xlu1 %v869_v3, %s1160_s15 }
0x15f2   :  { %v876_v52 = vpop.permute.xlu0 %875 }
0x15f3   :  { %v900_v55 = vsel %vm899_vm8, %v898_v7, %v876_v52 }
0x15f4   :  { %v902_v21 = vsel %vm901_vm9, %v900_v55, %v880_v53 }
0x15f6   :  { %v884_v54 = vpop.permute.xlu0 %883 }
0x15f7   :  { %v903_v58 = vsel %vm95_vm4, %v902_v21, %v884_v54 }
0x15f8   :  { %v905_v60 = vsel %vm904_vm10, %v903_v58, %v888_v56 }
0x15fa   :  { %v892_v59 = vpop.permute.xlu0 %891 }
0x15fb   :  { %v907_v61 = vsel %vm906_vm11, %v905_v60, %v892_v59 }
0x1663   :  { %v896_v62 = vpop.permute.xlu1 %895 }
0x1664   :  { %v909_v63 = vsel %vm908_vm12, %v907_v61, %v896_v62 }
0x1665   :  { %911 = vst.msk [vmem:[%s1375_s2] sm:$0xff] %vm910_vm13, %v909_v63 }

</bundles_post_ra>
